<compile_context>
chip_gen: v7x
topology: tpu7x:2x2x1
jax: 0.10.0
libtpu: 0.0.40
codegen_flags: <defaults>
</compile_context>

<pallas_src>
import jax
import jax.numpy as jnp
from jax.experimental import pallas as pl
from jax.experimental.pallas import tpu as pltpu


def _round_up(v, m):
    return ((v + m - 1) // m) * m


def _choose_graphs_per_block(num_graphs, n_p, target_rows=256):
    """Pick how many graphs share one grid step.

    Targets Gb*Np >= 256 rows (v6e/v7x MXU M dim; 128 already saturates v5e),
    but keeps at least 2 grid steps when possible so the "parallel" batch axis
    can shard across both v7x TensorCores.
    """
    gb = max(1, min(num_graphs, target_rows // max(n_p, 1)))
    if gb >= num_graphs and num_graphs > 1:
        gb = max(1, (num_graphs + 1) // 2)
    return gb


# ----------------------------------------------------------------------------
# Pallas kernel: fused 3-layer GCN forward for Gb graphs (one grid step)
# ----------------------------------------------------------------------------
def _gcn_kernel(a_ref, xw1_ref, b1_ref, w2_ref, b2_ref, w3_ref, b3_ref, o_ref):
    cdt = a_ref.dtype                       # matmul operand dtype (bf16 or f32)
    gb, n_p, _ = a_ref.shape                # (Gb, Np, Np)
    hid = w2_ref.shape[0]
    oc = w3_ref.shape[1]
    rows = gb * n_p

    a = a_ref[...]                          # (Gb, Np, Np)

    # --- layer 1: H = relu(A @ (X W1) + b1) ----------------------------------
    # X @ W1 was precomputed outside (reference association preserved).
    h3 = jnp.einsum('gij,gjh->gih', a, xw1_ref[...],
                    preferred_element_type=jnp.float32)            # (Gb,Np,H) f32
    h2 = jnp.maximum(h3.reshape(rows, hid) + b1_ref[...], 0.0)     # (R,H) f32

    # --- layer 2: H = relu(A @ (H W2) + b2) ----------------------------------
    hw = jnp.dot(h2.astype(cdt), w2_ref[...],
                 preferred_element_type=jnp.float32)               # one big MXU matmul
    h3 = jnp.einsum('gij,gjh->gih', a, hw.reshape(gb, n_p, hid).astype(cdt),
                    preferred_element_type=jnp.float32)
    h2 = jnp.maximum(h3.reshape(rows, hid) + b2_ref[...], 0.0)

    # --- layer 3: logits = A @ (H W3) + b3 -----------------------------------
    hw = jnp.dot(h2.astype(cdt), w3_ref[...],
                 preferred_element_type=jnp.float32)               # (R, 2)
    h3 = jnp.einsum('gij,gjc->gic', a, hw.reshape(gb, n_p, oc).astype(cdt),
                    preferred_element_type=jnp.float32)
    logits = h3.reshape(rows, oc) + b3_ref[...]                    # (R, 2) f32

    # --- stable log_softmax over the 2 real class lanes (dim=1) --------------
    m = jnp.max(logits, axis=-1, keepdims=True)
    lse = jnp.log(jnp.sum(jnp.exp(logits - m), axis=-1, keepdims=True)) + m
    o_ref[...] = (logits - lse).reshape(gb, n_p, oc)


# ----------------------------------------------------------------------------
# Wrapper: pad to hardware tiles, run Gb graphs per grid step
# ----------------------------------------------------------------------------
def gnn_vertex_cover_forward(a_hat, x, params, *, compute_dtype=jnp.bfloat16,
                             graphs_per_block=None):
    """a_hat: [B, N, N] f32, x: [B, N, C_in] f32  ->  [B, N, 2] f32 log-probs."""
    w1, b1, w2, b2, w3, b3 = params
    num_graphs, num_nodes, _ = a_hat.shape
    hidden = w1.shape[1]
    out_c = w3.shape[1]

    # Dtype-aware sublane tile: 8 rows (f32), 16 (bf16), 32 (int8/fp8).
    sub = 8 * 4 // jnp.dtype(compute_dtype).itemsize
    n_p = _round_up(num_nodes, sub)

    gb = graphs_per_block or _choose_graphs_per_block(num_graphs, n_p)
    b_pad = _round_up(num_graphs, gb)
    n_blocks = b_pad // gb

    # Layer-1 input projection done outside the kernel: tiny [N, C_in] x [C_in, H]
    # matmul, keeps the reference association A @ (X @ W1) and avoids shipping a
    # 128-lane zero-padded X through HBM.
    xw1 = jnp.einsum('bnc,ch->bnh', x, w1, preferred_element_type=jnp.float32)

    def pad_graphs(arr, rows, cols):
        return jnp.pad(arr, ((0, b_pad - arr.shape[0]),
                             (0, rows - arr.shape[1]),
                             (0, cols - arr.shape[2])))

    # Matmul operands in compute_dtype, biases stay f32 (added to f32 accum).
    a_p = pad_graphs(a_hat, n_p, n_p).astype(compute_dtype)
    xw1_p = pad_graphs(xw1, n_p, hidden).astype(compute_dtype)
    w2_p = w2.astype(compute_dtype)
    w3_p = w3.astype(compute_dtype)
    b1_p = b1.astype(jnp.float32)
    b2_p = b2.astype(jnp.float32)
    b3_p = b3.astype(jnp.float32)

    def graph_spec(last):                       # Gb graphs per step, batch-indexed
        return pl.BlockSpec((gb, n_p, last), lambda b: (b, 0, 0))

    def full_spec(shape):                       # shared weights: same block all steps
        return pl.BlockSpec(shape, lambda b: (0,) * len(shape))

    out = pl.pallas_call(
        _gcn_kernel,
        out_shape=jax.ShapeDtypeStruct((b_pad, n_p, out_c), jnp.float32),
        grid=(n_blocks,),
        in_specs=[
            graph_spec(n_p),                    # A_hat
            graph_spec(hidden),                 # X @ W1
            full_spec(b1_p.shape),
            full_spec(w2_p.shape), full_spec(b2_p.shape),
            full_spec(w3_p.shape), full_spec(b3_p.shape),
        ],
        out_specs=graph_spec(out_c),
        compiler_params=pltpu.CompilerParams(
            dimension_semantics=("parallel",),   # shards batch across v7x TCs
            vmem_limit_bytes=32 * 1024 * 1024,   # tiny working set; revisit for large-N tiling
        ),
    )(a_p, xw1_p, b1_p, w2_p, b2_p, w3_p, b3_p)

    return out[:num_graphs, :num_nodes, :]


# ----------------------------------------------------------------------------
# Glue: GCN normalization A_hat = D^-1/2 (A + I) D^-1/2, scatter-free
# (one-hot matmul + clamp; built ONCE per graph, reused across forward calls)
# ----------------------------------------------------------------------------
def build_normalized_adjacency(edge_index, num_nodes):
    src = edge_index[0]
    dst = edge_index[1]
    oh_dst = jax.nn.one_hot(dst, num_nodes, dtype=jnp.float32)      # [E, N]
    oh_src = jax.nn.one_hot(src, num_nodes, dtype=jnp.float32)      # [E, N]
    a = jnp.minimum(oh_dst.T @ oh_src, 1.0)                         # binary A[dst, src]
    a = jnp.maximum(a, jnp.eye(num_nodes, dtype=jnp.float32))       # self loops
    deg = jnp.sum(a, axis=1)
    dinv = jnp.where(deg > 0, jax.lax.rsqrt(deg), 0.0)
    return dinv[:, None] * a * dinv[None, :]


# ----------------------------------------------------------------------------
# Deterministic parameter init (shapes from GNNVertexCover.__init__)
# ----------------------------------------------------------------------------
def init_params(key, in_channels, hidden_channels, out_channels=2):
    ks = jax.random.split(key, 6)
    scale = 0.1
    w1 = scale * jax.random.normal(ks[0], (in_channels, hidden_channels), jnp.float32)
    b1 = scale * jax.random.normal(ks[1], (1, hidden_channels), jnp.float32)
    w2 = scale * jax.random.normal(ks[2], (hidden_channels, hidden_channels), jnp.float32)
    b2 = scale * jax.random.normal(ks[3], (1, hidden_channels), jnp.float32)
    w3 = scale * jax.random.normal(ks[4], (hidden_channels, out_channels), jnp.float32)
    b3 = scale * jax.random.normal(ks[5], (1, out_channels), jnp.float32)
    return (w1, b1, w2, b2, w3, b3)


# ----------------------------------------------------------------------------
# Pure-JAX reference (single graph)
# ----------------------------------------------------------------------------
def reference_forward(a_hat, x, params):
    w1, b1, w2, b2, w3, b3 = params
    h = jax.nn.relu(a_hat @ (x @ w1) + b1)
    h = jax.nn.relu(a_hat @ (h @ w2) + b2)
    h = a_hat @ (h @ w3) + b3
    return jax.nn.log_softmax(h, axis=1)


if __name__ == "__main__":
    num_graphs = 16
    num_nodes = 16
    in_channels = 4
    hidden_channels = 32

    key = jax.random.PRNGKey(0)
    k_x, k_p = jax.random.split(key)

    # Node features for a batch of graphs: [B, N, C_in]
    x = jax.random.normal(k_x, (num_graphs, num_nodes, in_channels), jnp.float32)

    # Deterministic per-graph topology: undirected ring + two graph-dependent chords.
    a_hats = []
    for g in range(num_graphs):
        src_list, dst_list = [], []
        for i in range(num_nodes):
            j = (i + 1) % num_nodes
            src_list += [i, j]
            dst_list += [j, i]
        for (i, j) in [(g % num_nodes, (g + 8) % num_nodes),
                       ((g + 3) % num_nodes, (g + 11) % num_nodes)]:
            src_list += [i, j]
            dst_list += [j, i]
        edge_index = jnp.array([src_list, dst_list], dtype=jnp.int32)
        a_hats.append(build_normalized_adjacency(edge_index, num_nodes))
    a_hat = jnp.stack(a_hats)        # [B, N, N], built once, reused across calls

    params = init_params(k_p, in_channels, hidden_channels)

    # Fast path: bf16 matmul operands, f32 accumulation/elementwise.
    out = gnn_vertex_cover_forward(a_hat, x, params, compute_dtype=jnp.bfloat16)
    out = jax.block_until_ready(out)

    # Debug-only strict-verification path: f32 everywhere through the same kernel.
    out_f32 = gnn_vertex_cover_forward(a_hat, x, params, compute_dtype=jnp.float32)
    out_f32 = jax.block_until_ready(out_f32)

    ref = jax.vmap(lambda a, xg: reference_forward(a, xg, params))(a_hat, x)

    assert out.shape == (num_graphs, num_nodes, 2)
    assert jnp.allclose(out_f32, ref, atol=1e-5, rtol=1e-5)
    assert jnp.allclose(out, ref, atol=2e-2, rtol=2e-2)

    print("KERNEL_OK")
</pallas_src>

<mosaic_0001>
module attributes {stable_mosaic.version = 11 : i64} {
  func.func @_gcn_kernel(%arg0: i32, %arg1: memref<8x16x16xbf16, #tpu.memory_space<vmem>>, %arg2: memref<8x16x32xbf16, #tpu.memory_space<vmem>>, %arg3: memref<1x32xf32, #tpu.memory_space<vmem>>, %arg4: memref<32x32xbf16, #tpu.memory_space<vmem>>, %arg5: memref<1x32xf32, #tpu.memory_space<vmem>>, %arg6: memref<32x2xbf16, #tpu.memory_space<vmem>>, %arg7: memref<1x2xf32, #tpu.memory_space<vmem>>, %arg8: memref<8x16x2xf32, #tpu.memory_space<vmem>>) attributes {dimension_semantics = [#tpu.dimension_semantics<parallel>], iteration_bounds = array<i64: 2>, scalar_prefetch = 0 : i64, scratch_operands = 0 : i64, tpu.core_type = #tpu.core_type<tc>, window_params = [{transform_indices = @transform_0, window_bounds = array<i64: 8, 16, 16>}, {transform_indices = @transform_1, window_bounds = array<i64: 8, 16, 32>}, {pipeline_mode = #tpu.pipeline_mode<synchronous>, transform_indices = @transform_2, window_bounds = array<i64: 1, 32>}, {pipeline_mode = #tpu.pipeline_mode<synchronous>, transform_indices = @transform_3, window_bounds = array<i64: 32, 32>}, {pipeline_mode = #tpu.pipeline_mode<synchronous>, transform_indices = @transform_4, window_bounds = array<i64: 1, 32>}, {pipeline_mode = #tpu.pipeline_mode<synchronous>, transform_indices = @transform_5, window_bounds = array<i64: 32, 2>}, {pipeline_mode = #tpu.pipeline_mode<synchronous>, transform_indices = @transform_6, window_bounds = array<i64: 1, 2>}, {transform_indices = @transform_7, window_bounds = array<i64: 8, 16, 2>}]} {
    %c0 = arith.constant 0 : index
    %c0_0 = arith.constant 0 : index
    %c0_1 = arith.constant 0 : index
    %0 = vector.load %arg1[%c0, %c0_0, %c0_1] : memref<8x16x16xbf16, #tpu.memory_space<vmem>>, vector<8x16x16xbf16>
    %c0_2 = arith.constant 0 : index
    %c0_3 = arith.constant 0 : index
    %c0_4 = arith.constant 0 : index
    %1 = vector.load %arg2[%c0_2, %c0_3, %c0_4] : memref<8x16x32xbf16, #tpu.memory_space<vmem>>, vector<8x16x32xbf16>
    "tpu.trace_start"() <{level = 10 : i32, message = "gij,gjh->gih"}> : () -> ()
    %cst = arith.constant dense<0.000000e+00> : vector<8x16x32xf32>
    %2 = tpu.matmul %0, %1, %cst {dimension_numbers = #tpu.dot_dimension_numbers<[2], [1], [1], [2], [0, 0, 0, 1, 1, 2], [0], [0]>} : vector<8x16x16xbf16>, vector<8x16x32xbf16>, vector<8x16x32xf32> -> vector<8x16x32xf32>
    "tpu.trace_stop"() : () -> ()
    %3 = vector.shape_cast %2 : vector<8x16x32xf32> to vector<128x32xf32>
    %c0_5 = arith.constant 0 : index
    %c0_6 = arith.constant 0 : index
    %4 = vector.load %arg3[%c0_5, %c0_6] : memref<1x32xf32, #tpu.memory_space<vmem>>, vector<1x32xf32>
    %5 = vector.broadcast %4 : vector<1x32xf32> to vector<128x32xf32>
    %6 = arith.addf %3, %5 : vector<128x32xf32>
    %cst_7 = arith.constant 0.000000e+00 : f32
    %7 = vector.broadcast %cst_7 : f32 to vector<128x32xf32>
    %8 = arith.maximumf %6, %7 : vector<128x32xf32>
    %9 = arith.truncf %8 : vector<128x32xf32> to vector<128x32xbf16>
    %c0_8 = arith.constant 0 : index
    %c0_9 = arith.constant 0 : index
    %10 = vector.load %arg4[%c0_8, %c0_9] : memref<32x32xbf16, #tpu.memory_space<vmem>>, vector<32x32xbf16>
    %cst_10 = arith.constant dense<0.000000e+00> : vector<128x32xf32>
    %11 = tpu.matmul %9, %10, %cst_10 {dimension_numbers = #tpu.dot_dimension_numbers<[1], [0], [0], [1], [0, 0, 1, 1], [], []>} : vector<128x32xbf16>, vector<32x32xbf16>, vector<128x32xf32> -> vector<128x32xf32>
    %12 = vector.shape_cast %11 : vector<128x32xf32> to vector<8x16x32xf32>
    %13 = arith.truncf %12 : vector<8x16x32xf32> to vector<8x16x32xbf16>
    "tpu.trace_start"() <{level = 10 : i32, message = "gij,gjh->gih"}> : () -> ()
    %cst_11 = arith.constant dense<0.000000e+00> : vector<8x16x32xf32>
    %14 = tpu.matmul %0, %13, %cst_11 {dimension_numbers = #tpu.dot_dimension_numbers<[2], [1], [1], [2], [0, 0, 0, 1, 1, 2], [0], [0]>} : vector<8x16x16xbf16>, vector<8x16x32xbf16>, vector<8x16x32xf32> -> vector<8x16x32xf32>
    "tpu.trace_stop"() : () -> ()
    %15 = vector.shape_cast %14 : vector<8x16x32xf32> to vector<128x32xf32>
    %c0_12 = arith.constant 0 : index
    %c0_13 = arith.constant 0 : index
    %16 = vector.load %arg5[%c0_12, %c0_13] : memref<1x32xf32, #tpu.memory_space<vmem>>, vector<1x32xf32>
    %17 = vector.broadcast %16 : vector<1x32xf32> to vector<128x32xf32>
    %18 = arith.addf %15, %17 : vector<128x32xf32>
    %cst_14 = arith.constant 0.000000e+00 : f32
    %19 = vector.broadcast %cst_14 : f32 to vector<128x32xf32>
    %20 = arith.maximumf %18, %19 : vector<128x32xf32>
    %21 = arith.truncf %20 : vector<128x32xf32> to vector<128x32xbf16>
    %c0_15 = arith.constant 0 : index
    %c0_16 = arith.constant 0 : index
    %22 = vector.load %arg6[%c0_15, %c0_16] : memref<32x2xbf16, #tpu.memory_space<vmem>>, vector<32x2xbf16>
    %cst_17 = arith.constant dense<0.000000e+00> : vector<128x2xf32>
    %23 = tpu.matmul %21, %22, %cst_17 {dimension_numbers = #tpu.dot_dimension_numbers<[1], [0], [0], [1], [0, 0, 1, 1], [], []>} : vector<128x32xbf16>, vector<32x2xbf16>, vector<128x2xf32> -> vector<128x2xf32>
    %24 = vector.shape_cast %23 : vector<128x2xf32> to vector<8x16x2xf32>
    %25 = arith.truncf %24 : vector<8x16x2xf32> to vector<8x16x2xbf16>
    "tpu.trace_start"() <{level = 10 : i32, message = "gij,gjc->gic"}> : () -> ()
    %cst_18 = arith.constant dense<0.000000e+00> : vector<8x16x2xf32>
    %26 = tpu.matmul %0, %25, %cst_18 {dimension_numbers = #tpu.dot_dimension_numbers<[2], [1], [1], [2], [0, 0, 0, 1, 1, 2], [0], [0]>} : vector<8x16x16xbf16>, vector<8x16x2xbf16>, vector<8x16x2xf32> -> vector<8x16x2xf32>
    "tpu.trace_stop"() : () -> ()
    %27 = vector.shape_cast %26 : vector<8x16x2xf32> to vector<128x2xf32>
    %c0_19 = arith.constant 0 : index
    %c0_20 = arith.constant 0 : index
    %28 = vector.load %arg7[%c0_19, %c0_20] : memref<1x2xf32, #tpu.memory_space<vmem>>, vector<1x2xf32>
    %29 = vector.broadcast %28 : vector<1x2xf32> to vector<128x2xf32>
    %30 = arith.addf %27, %29 : vector<128x2xf32>
    %cst_21 = arith.constant dense<0xFF800000> : vector<128xf32>
    %31 = vector.multi_reduction <maximumf>, %30, %cst_21 [1] : vector<128x2xf32> to vector<128xf32>
    %32 = vector.shape_cast %31 : vector<128xf32> to vector<128x1xf32>
    %33 = vector.broadcast %32 : vector<128x1xf32> to vector<128x2xf32>
    %34 = arith.subf %30, %33 : vector<128x2xf32>
    %35 = math.exp %34 : vector<128x2xf32>
    %cst_22 = arith.constant dense<0.000000e+00> : vector<128xf32>
    %36 = vector.multi_reduction <add>, %35, %cst_22 [1] : vector<128x2xf32> to vector<128xf32>
    %37 = vector.shape_cast %36 : vector<128xf32> to vector<128x1xf32>
    %38 = math.log %37 : vector<128x1xf32>
    %39 = arith.addf %38, %32 : vector<128x1xf32>
    %40 = vector.broadcast %39 : vector<128x1xf32> to vector<128x2xf32>
    %41 = arith.subf %30, %40 : vector<128x2xf32>
    %42 = vector.shape_cast %41 : vector<128x2xf32> to vector<8x16x2xf32>
    %c0_23 = arith.constant 0 : index
    %c0_24 = arith.constant 0 : index
    %c0_25 = arith.constant 0 : index
    %43 = vector.load %arg8[%c0_23, %c0_24, %c0_25] : memref<8x16x2xf32, #tpu.memory_space<vmem>>, vector<8x16x2xf32>
    tpu.vector_store %arg8[%c0_23, %c0_24, %c0_25], %42 {strides = array<i32>} : memref<8x16x2xf32, #tpu.memory_space<vmem>>, vector<8x16x2xf32>,
    return
  }
  func.func @transform_0(%arg0: i32) -> (i32, i32, i32) {
    %c0_i32 = arith.constant 0 : i32
    %c0_i32_0 = arith.constant 0 : i32
    %c0_i32_1 = arith.constant 0 : i32
    return %arg0, %c0_i32, %c0_i32_0 : i32, i32, i32
  }
  func.func @transform_1(%arg0: i32) -> (i32, i32, i32) {
    %c0_i32 = arith.constant 0 : i32
    %c0_i32_0 = arith.constant 0 : i32
    %c0_i32_1 = arith.constant 0 : i32
    return %arg0, %c0_i32, %c0_i32_0 : i32, i32, i32
  }
  func.func @transform_2(%arg0: i32) -> (i32, i32) {
    %c0_i32 = arith.constant 0 : i32
    %c0_i32_0 = arith.constant 0 : i32
    %c0_i32_1 = arith.constant 0 : i32
    return %c0_i32, %c0_i32_0 : i32, i32
  }
  func.func @transform_3(%arg0: i32) -> (i32, i32) {
    %c0_i32 = arith.constant 0 : i32
    %c0_i32_0 = arith.constant 0 : i32
    %c0_i32_1 = arith.constant 0 : i32
    return %c0_i32, %c0_i32_0 : i32, i32
  }
  func.func @transform_4(%arg0: i32) -> (i32, i32) {
    %c0_i32 = arith.constant 0 : i32
    %c0_i32_0 = arith.constant 0 : i32
    %c0_i32_1 = arith.constant 0 : i32
    return %c0_i32, %c0_i32_0 : i32, i32
  }
  func.func @transform_5(%arg0: i32) -> (i32, i32) {
    %c0_i32 = arith.constant 0 : i32
    %c0_i32_0 = arith.constant 0 : i32
    %c0_i32_1 = arith.constant 0 : i32
    return %c0_i32, %c0_i32_0 : i32, i32
  }
  func.func @transform_6(%arg0: i32) -> (i32, i32) {
    %c0_i32 = arith.constant 0 : i32
    %c0_i32_0 = arith.constant 0 : i32
    %c0_i32_1 = arith.constant 0 : i32
    return %c0_i32, %c0_i32_0 : i32, i32
  }
  func.func @transform_7(%arg0: i32) -> (i32, i32, i32) {
    %c0_i32 = arith.constant 0 : i32
    %c0_i32_0 = arith.constant 0 : i32
    %c0_i32_1 = arith.constant 0 : i32
    return %arg0, %c0_i32, %c0_i32_0 : i32, i32, i32
  }
}

</mosaic_0001>

<bundles_post_ra>
// kernel: tpu_custom_call.1
= control target key start
LH: loop header
LB: loop body
LE: loop exit
PB: predicated region body
PF: predicated region fallthrough
CT: control target
= control target key end

     0   :  { %12 = vsyncpa [#allocation3], 0  ;;  %s3443_s0 = inlined_call_operand.hbm [shape: bf16[16,16,16], index: 0, kind: input, shape index: {}]   ;;  %s3444_s1 = inlined_call_operand.hbm [shape: bf16[16,16,32], index: 1, kind: input, shape index: {}]   ;;  %s3445_s2 = inlined_call_operand.vmem [shape: f32[1,32], index: 2, kind: input, shape index: {}]   ;;  %s3446_s3 = inlined_call_operand.vmem [shape: bf16[32,32], index: 3, kind: input, shape index: {}]   ;;  %s3447_s4 = inlined_call_operand.vmem [shape: f32[1,32], index: 4, kind: input, shape index: {}]   ;;  %s3448_s5 = inlined_call_operand.vmem [shape: bf16[32,2], index: 5, kind: input, shape index: {}]   ;;  %s3449_s6 = inlined_call_operand.vmem [shape: f32[1,2], index: 6, kind: input, shape index: {}]   ;;  %s3450_s7 = inlined_call_operand.vmem [shape: f32[16,16,2], index: 7, kind: output, shape index: {}]  }
   0x1   :  { %14 = vsyncpa [#allocation3 + $0x1], 0 }
   0x2   :  { %15 = vsyncpa [#allocation5], 0 }
   0x3   :  { %17 = vsyncpa [#allocation5 + $0x1], 0  ;;  %s2819_s24 = smov 0   ;;  %s2821_s25 = smov 0  }
   0x4   :  { %s2823_s26 = smov 0   ;;  %s2825_s27 = smov 0  }
   0x5 LB: > { %s2201_s28 = sadd.s32 4294967295, %s2771_s27   ;;  %s2839_s29 = sadd.s32 1, %s2771_s27   ;;  %s2771_s27 = sphi %s2825_s27, %s3460_s27   ;;  %s2767_s26 = sphi %s2823_s26, %s3459_s26   ;;  %s2763_s25 = sphi %s2821_s25, %s3458_s25   ;;  %s2759_s24 = sphi %s2819_s24, %s3457_s24  }
   0x6   : > { %s27_s30 = ssub.s32 %s2771_s27, %s2839_s29  ;;  %s30_s8 = sadd.s32 1, %s2767_s26 }
   0x7   : > { %p28_p0 = scmp.eq.s32.totalorder %s27_s30, 0  ;;  %p37_p1 = scmp.ne.s32.totalorder %s2767_s26, %s2763_s25 }
   0x8   : > { %p38_p2 = scmp.eq.s32.totalorder %s2771_s27, 0  ;;  %p43_p3 = scmp.ne.s32.totalorder %s2763_s25, %s2759_s24 }
   0x9   : > { %s2849_s9 = scalar_select %p28_p0, %s2767_s26, %s30_s8  }
   0xa   : > { %p39_p4 = por %p38_p2, %p37_p1  ;;  %p44_p5 = scmp.eq.s32.totalorder %s2201_s28, 0 }
   0xb   : > { %p2552_p6 = scmp.lt.s32.totalorder %s2771_s27, 2  ;;  %s2859_s11 = sand.u32 1, %s2767_s26  }
   0xc   : > { %p2854_p7 = por %p44_p5, %p43_p3  ;;  %s2205_s12 = sshll.u32 %s2859_s11, 6 }
   0xd   : > { %s2285_s13 = sshll.u32 %s2771_s27, 10  ;;  %s243_s17 = scalar_lea.vmem [#allocation2], %s2205_s12 }
   0xe   : > { %s3452_s10 = scalar_select %p2854_p7, 1, 0 }
   0xf   : > { %s2868_s16 = scalar_lea.hbm %s3443_s0, %s2285_s13  ;;  %s251_s18 = sshll.u32 %s243_s17, 4  ;;  %s2872_s18 = int_to_ptr.vmem [resolvable:$true] %s251_s18 }
  0x10   : > { %p2874_p8 = pnand %p2552_p6, %p39_p4  ;;  %s240_s20 = scalar_lea.sflag [#allocation3], %s2859_s11 }
  0x11   : > { %s2673_s21 = scalar_lea.hbm %s2868_s16, 1024  ;;  %s2678_s24 = scalar_lea.hbm %s3443_s0, 2048 }
  0x12   : > { %p2674_p10 = scmp.ne.s32.totalorder %s2868_s16, %s2673_s21  ;;  %p2675_p11 = pneg %p2874_p8 }
  0x13   : > { %p2679_p0 = scmp.lt.u32.totalorder %s2868_s16, %s3443_s0  ;;  %p2680_p1 = scmp.lt.u32.totalorder %s2678_s24, %s2673_s21 }
  0x14   : > { %p2676_p12 = pnand %p2675_p11, %p2674_p10  ;;  %p2682_p3 = scmp.lt.u32.totalorder %s2673_s21, %s2868_s16 }
  0x15   : > { %p2681_p2 = por %p2680_p1, %p2679_p0 }
  0x16   : > { %p2677_p13 = pneg %p2676_p12 }
  0x17   : > { %p2683_p4 = por %p2682_p3, %p2681_p2 }
  0x19   : > { %p2684_p5 = pnand %p2683_p4, %p2677_p13 }
  0x1b   : > { %2687 = shalt.err (!%p2684_p5)
}
  0x1c   : > { %s2688_s14 = scalar_lea.vmem %s2872_s18, 1024  ;;  %s2773_s15 = smov [#allocation2]  }
  0x1d   : > { %p2689_p6 = scmp.ne.s32.totalorder %s2872_s18, %s2688_s14  ;;  %s2693_s17 = sshll.u32 %s2773_s15, 4  ;;  %s2694_s17 = int_to_ptr.vmem [resolvable:$false] %s2693_s17 }
  0x1e   : > { %s2695_s22 = scalar_lea.vmem %s2694_s17, 2048  ;;  %p2696_p9 = scmp.lt.s32.totalorder %s2872_s18, %s2694_s17 }
  0x1f   : > { %p2691_p10 = pnand %p2689_p6, %p2675_p11  ;;  %p2697_p0 = scmp.lt.s32.totalorder %s2695_s22, %s2688_s14 }
  0x21   : > { %p2692_p12 = pneg %p2691_p10  ;;  %p2698_p1 = por %p2697_p0, %p2696_p9 }
  0x23   : > { %p2699_p2 = pnand %p2698_p1, %p2692_p12 }
  0x25   : > { %2702 = shalt.err (!%p2699_p2)
}
  0x26   : > { %s2774_s21 = smov 64   ;;  %s2775_s23 = smov 4  }
  0x27   : > { %2548 = dma.hbm_to_vmem [thread:$0]  (!%p2874_p8), %s2868_s16, 1024, %s2872_s18, %s240_s20, %s2774_s21, %s2774_s21, %s2775_s23  }
  0x28   : > { %p281_p9 = scmp.lt.s32.totalorder %s2771_s27, 3  ;;  %s2916_s8 = scalar_lea.hbm %s3444_s1, %s2285_s13 }
  0x29   : > { %p3454_p13 = scmp.ge.s32.totalorder %s2771_s27, 1  ;;  %s265_s15 = scalar_lea.vmem [#allocation4], %s2205_s12 }
  0x2a   : > { %s273_s17 = sshll.u32 %s265_s15, 4  ;;  %s262_s16 = scalar_lea.sflag [#allocation5], %s2859_s11  ;;  %s2926_s17 = int_to_ptr.vmem [resolvable:$true] %s273_s17 }
  0x2b   : > { %p2920_p3 = pnand %p3454_p13, %p281_p9  ;;  %s2703_s18 = scalar_lea.hbm %s2916_s8, 1024 }
  0x2c   : > { %p2704_p4 = scmp.ne.s32.totalorder %s2916_s8, %s2703_s18  ;;  %s2708_s22 = scalar_lea.hbm %s3444_s1, 2048 }
  0x2d   : > { %p2709_p10 = scmp.lt.u32.totalorder %s2916_s8, %s3444_s1  ;;  %p2710_p12 = scmp.lt.u32.totalorder %s2708_s22, %s2703_s18 }
  0x2e   : > { %p2706_p5 = pnand %p2704_p4, %p2675_p11  ;;  %p2712_p1 = scmp.lt.u32.totalorder %s2703_s18, %s2916_s8 }
  0x2f   : > { %p2711_p0 = por %p2710_p12, %p2709_p10 }
  0x30   : > { %p2707_p6 = pneg %p2706_p5 }
  0x31   : > { %p2713_p2 = por %p2712_p1, %p2711_p0 }
  0x33   : > { %p2714_p9 = pnand %p2713_p2, %p2707_p6 }
  0x35   : > { %2717 = shalt.err (!%p2714_p9)
}
  0x36   : > { %s2718_s12 = scalar_lea.vmem %s2926_s17, 1024  ;;  %s2776_s15 = smov [#allocation4]  }
  0x37   : > { %p2719_p13 = scmp.ne.s32.totalorder %s2926_s17, %s2718_s12  ;;  %s2723_s13 = sshll.u32 %s2776_s15, 4  ;;  %s2724_s13 = int_to_ptr.vmem [resolvable:$false] %s2723_s13 }
  0x38   : > { %s2725_s20 = scalar_lea.vmem %s2724_s13, 2048  ;;  %p2726_p7 = scmp.lt.s32.totalorder %s2926_s17, %s2724_s13 }
  0x39   : > { %p2721_p4 = pnand %p2719_p13, %p2675_p11  ;;  %p2727_p10 = scmp.lt.s32.totalorder %s2725_s20, %s2718_s12 }
  0x3b   : > { %p2722_p5 = pneg %p2721_p4  ;;  %p2728_p12 = por %p2727_p10, %p2726_p7 }
  0x3d   : > { %p2729_p0 = pnand %p2728_p12, %p2722_p5 }
  0x3f   : > { %2732 = shalt.err (!%p2729_p0)
}
  0x40   : > { %2551 = dma.hbm_to_vmem [thread:$0]  (!%p2874_p8), %s2916_s8, 1024, %s2926_s17, %s262_s16, %s2774_s21, %s2774_s21, %s2775_s23  }
  0x41   : > { %285 = sbr.rel (%p2920_p3) target bundleno = 1545 (0x609), region = 48  ;;  %s287_s18 = sand.u32 (!%p2920_p3), 1, %s2763_s25  }
  0x42   : > { %s2214_s22 = sshll.u32 (!%p2920_p3), %s287_s18, 6  ;;  %s288_s24 = scalar_lea.sflag (!%p2920_p3), [#allocation3], %s287_s18 }
  0x43   : > { %s2960_s30 = scalar_lea.vmem (!%p2920_p3), [#allocation2], %s2214_s22  ;;  %p3456_p7 = scmp.ne.s32.totalorder (!%p2920_p3), %s3452_s10, 0 }
  0x48   : > { %2750 = dma.done.wait (%p3456_p7), %s288_s24, 1024  }
  0x49   : > { %2752 = vsyncadd (%p3456_p7), %s288_s24, 4294966272  ;;  %s297_s11 = scalar_lea.sflag [#allocation5], %s287_s18  ;;  %s2966_s19 = scalar_lea.vmem [#allocation4], %s2214_s22 }
  0x4a   : > { %2754 = dma.done.wait (%p3456_p7), %s297_s11, 1024  }
  0x4b   : > { %2756 = vsyncadd (%p3456_p7), %s297_s11, 4294966272  ;;  %v2777_v0 = vmov 0.0   ;;  %vm2778_vm0 = vmmov 0   ;;  %v2589_v1 = vld [vmem:[%s2966_s19] sm:$0xff]   ;;  %v2590_v2 = vld [vmem:[%s2966_s19 + $0x8] sm:$0xff]   ;;  %vm390_vm1 = vcmask 130048  }
  0x4c   : > { %2357 = vmatprep.subr.bf16.mxu0 %v2777_v0  ;;  %2363 = vmatprep.subr.bf16.mxu1 %v2777_v0  ;;  %v2981_v3 = vld [vmem:[%s2960_s30] sm:$0xff]   ;;  %v2984_v4 = vld [vmem:[%s2960_s30 + $0x8] sm:$0xff]   ;;  %v2593_v5 = vld [vmem:[%s2966_s19 + $0x10] sm:$0xff]   ;;  %vm883_vm2 = vcmask 261120   ;;  %vm1884_vm3 = vcmask 15360  }
  0x4d   : > { %2359 = vmatprep.mubr.msk.bf16.mxu0 %vm2778_vm0, %v2777_v0  ;;  %2365 = vmatprep.mubr.msk.bf16.mxu1 %vm2778_vm0, %v2777_v0  ;;  %v2594_v6 = vld [vmem:[%s2966_s19 + $0x18] sm:$0xff]   ;;  %v2997_v7 = vld [vmem:[%s2960_s30 + $0x10] sm:$0xff]   ;;  %v2597_v9 = vld [vmem:[%s2966_s19 + $0x20] sm:$0xff]  }
  0x4e   : > { %2358 = vmatpush3.bf16.msra.mxu0 %v2589_v1  ;;  %2364 = vmatpush3.bf16.msra.mxu1 %v2590_v2  ;;  %v3003_v8 = vld [vmem:[%s2960_s30 + $0x18] sm:$0xff]   ;;  %v2598_v10 = vld [vmem:[%s2966_s19 + $0x28] sm:$0xff]   ;;  %v3015_v11 = vld [vmem:[%s2960_s30 + $0x20] sm:$0xff]  }
  0x4f   : > { %2369 = vmatprep.subr.bf16.mxu0 %v2777_v0  ;;  %2375 = vmatprep.subr.bf16.mxu1 %v2777_v0  ;;  %v3020_v12 = vld [vmem:[%s2960_s30 + $0x28] sm:$0xff]   ;;  %v2601_v13 = vld [vmem:[%s2966_s19 + $0x30] sm:$0xff]   ;;  %v2602_v14 = vld [vmem:[%s2966_s19 + $0x38] sm:$0xff]  }
  0x50   : > { %v3036_v15 = vld [vmem:[%s2960_s30 + $0x30] sm:$0xff]   ;;  %v3039_v16 = vld [vmem:[%s2960_s30 + $0x38] sm:$0xff]   ;;  %v2605_v17 = vld [vmem:[%s3446_s3] sm:$0xff]   ;;  %s2216_s30 = sshll.u32 %s2201_s28, 3 }
  0x51   : > { %2360 = vmatmul.mubr.msk.bf16.vlgmr.msra.gmra.mrb[0].mxu0 %vm390_vm1, %v2981_v3  ;;  %2366 = vmatmul.mubr.msk.bf16.vlgmr.msra.gmra.mrb[0].mxu1 %vm390_vm1, %v2984_v4  ;;  %v2606_v18 = vld [vmem:[%s3446_s3 + $0x8] sm:$0xff]   ;;  %v3057_v19 = vld [vmem:[%s3445_s2] ss:$0 sm:$0xff]  ;;  %p340_p8 = scmp.lt.s32.totalorder %s2216_s30, 15 }
  0x52   : > { %2370 = vmatpush3.bf16.msra.mxu0 %v2593_v5  ;;  %2376 = vmatpush3.bf16.msra.mxu1 %v2594_v6 }
  0x53   : > { %2371 = vmatprep.mubr.msk.bf16.mxu0 %vm2778_vm0, %v2777_v0  ;;  %2377 = vmatprep.mubr.msk.bf16.mxu1 %vm2778_vm0, %v2777_v0  ;;  %s3462_s30 = smov (!%p340_p8, %s2216_s30), 15 }
  0x54   : > { %2381 = vmatprep.subr.bf16.mxu0 %v2777_v0  ;;  %2387 = vmatprep.subr.bf16.mxu1 %v2777_v0  ;;  %s2288_s11 = sshll.u32 %s3462_s30, 4 }
  0x55   : > { %s3365_s27 = scalar_lea.vmem %s3450_s7, %s2288_s11 }
  0x59   : > { %2372 = vmatmul.mubr.msk.bf16.vlgmr.msra.gmra.mrb[4].mxu0 %vm390_vm1, %v2997_v7  ;;  %2378 = vmatmul.mubr.msk.bf16.vlgmr.msra.gmra.mrb[4].mxu1 %vm390_vm1, %v3003_v8 }
  0x5a   : > { %2382 = vmatpush3.bf16.msra.mxu0 %v2597_v9  ;;  %2388 = vmatpush3.bf16.msra.mxu1 %v2598_v10 }
  0x5b   : > { %2383 = vmatprep.mubr.msk.bf16.mxu0 %vm2778_vm0, %v2777_v0  ;;  %2389 = vmatprep.mubr.msk.bf16.mxu1 %vm2778_vm0, %v2777_v0 }
  0x5c   : > { %2393 = vmatprep.subr.bf16.mxu0 %v2777_v0  ;;  %2399 = vmatprep.subr.bf16.mxu1 %v2777_v0 }
  0x61   : > { %2384 = vmatmul.mubr.msk.bf16.vlgmr.msra.gmra.mrb[8].mxu0 %vm390_vm1, %v3015_v11  ;;  %2390 = vmatmul.mubr.msk.bf16.vlgmr.msra.gmra.mrb[8].mxu1 %vm390_vm1, %v3020_v12 }
  0x62   : > { %2394 = vmatpush3.bf16.msra.mxu0 %v2601_v13  ;;  %2400 = vmatpush3.bf16.msra.mxu1 %v2602_v14 }
  0x63   : > { %2395 = vmatprep.mubr.msk.bf16.mxu0 %vm2778_vm0, %v2777_v0  ;;  %2401 = vmatprep.mubr.msk.bf16.mxu1 %vm2778_vm0, %v2777_v0 }
  0x64   : > { %2425 = vmatprep.subr.bf16.mxu1 %v2777_v0  ;;  %2405 = vmatprep.subr.bf16.mxu0 %v2605_v17 }
  0x69   : > { %2396 = vmatmul.mubr.msk.bf16.vlgmr.msra.gmra.mrb[12].mxu0 %vm390_vm1, %v3036_v15  ;;  %2402 = vmatmul.mubr.msk.bf16.vlgmr.msra.gmra.mrb[12].mxu1 %vm390_vm1, %v3039_v16 }
  0x6a   : > { %2427 = vmatprep.mubr.msk.bf16.mxu1 %vm2778_vm0, %v2777_v0  ;;  %2406 = vmatpush3.bf16.msra.mxu0 %v2605_v17 }
  0x6b   : > { %2407 = vmatprep.subr.bf16.mxu0 %v2606_v18 }
  0x6e   : > { %2408 = vmatpush3.bf16.msra.mxu0 %v2606_v18 }
  0x6f   : > { %2449 = vmatprep.subr.bf16.mxu0 %v2777_v0 }
 0x124   : > { %v428_v20 = vpop.f32.mrb[0].mxu0  ;;  %v483_v22 = vpop.f32.mrb[0].mxu1 }
 0x125   : > { %v827_v21 = vadd.f32 %v3057_v19, %v428_v20  ;;  %v2361_v23 = vpop.f32.mrb[1].mxu0  ;;  %v829_v24 = vadd.f32 %v3057_v19, %v483_v22  ;;  %v2367_v25 = vpop.f32.mrb[1].mxu1 }
 0x126   : > { %v431_v26 = vpop.f32.mrb[2].mxu0  ;;  %v486_v28 = vpop.f32.mrb[2].mxu1 }
 0x127   : > { %v828_v27 = vadd.f32 %v3057_v19, %v431_v26  ;;  %v2362_v29 = vpop.f32.mrb[3].mxu0  ;;  %v845_v30 = vmax.f32 %v829_v24, 0.0  ;;  %v830_v31 = vadd.f32 %v3057_v19, %v486_v28  ;;  %v2368_v32 = vpop.f32.mrb[3].mxu1  ;;  %v843_v33 = vmax.f32 %v827_v21, 0.0 }
 0x129   : > { %v844_v34 = vmax.f32 %v828_v27, 0.0  ;;  %v846_v35 = vmax.f32 %v830_v31, 0.0 }
 0x12b   : > { %v859_v36 = vpack.c.bf16 %v844_v34, %v843_v33  ;;  %v860_v37 = vpack.c.bf16 %v846_v35, %v845_v30 }
 0x12c   : > { %v538_v38 = vpop.f32.mrb[4].mxu0  ;;  %v593_v41 = vpop.f32.mrb[4].mxu1 }
 0x12d   : > { %2409 = vmatprep.mubr.msk.bf16.mxu0 %vm883_vm2, %v859_v36  ;;  %v831_v39 = vadd.f32 %v3057_v19, %v538_v38  ;;  %v2373_v40 = vpop.f32.mrb[5].mxu0  ;;  %v833_v42 = vadd.f32 %v3057_v19, %v593_v41  ;;  %v2379_v44 = vpop.f32.mrb[5].mxu1 }
 0x12e   : > { %2410 = vmatmul.mubr.msk.bf16.vlgmr.msra.gmra.mrb[16].mxu0 %vm883_vm2, %v860_v37  ;;  %v541_v43 = vpop.f32.mrb[6].mxu0  ;;  %v596_v47 = vpop.f32.mrb[6].mxu1 }
 0x12f   : > { %v847_v45 = vmax.f32 %v831_v39, 0.0  ;;  %v832_v46 = vadd.f32 %v3057_v19, %v541_v43  ;;  %v2374_v48 = vpop.f32.mrb[7].mxu0  ;;  %v849_v49 = vmax.f32 %v833_v42, 0.0  ;;  %v834_v50 = vadd.f32 %v3057_v19, %v596_v47  ;;  %v2380_v51 = vpop.f32.mrb[7].mxu1 }
 0x131   : > { %v848_v52 = vmax.f32 %v832_v46, 0.0  ;;  %v850_v53 = vmax.f32 %v834_v50, 0.0 }
 0x133   : > { %v861_v54 = vpack.c.bf16 %v848_v52, %v847_v45  ;;  %v862_v55 = vpack.c.bf16 %v850_v53, %v849_v49 }
 0x134   : > { %v648_v56 = vpop.f32.mrb[8].mxu0  ;;  %v703_v59 = vpop.f32.mrb[8].mxu1 }
 0x135   : > { %2413 = vmatprep.mubr.msk.bf16.mxu0 %vm883_vm2, %v861_v54  ;;  %v835_v57 = vadd.f32 %v3057_v19, %v648_v56  ;;  %v2385_v58 = vpop.f32.mrb[9].mxu0  ;;  %v837_v60 = vadd.f32 %v3057_v19, %v703_v59  ;;  %v2391_v62 = vpop.f32.mrb[9].mxu1 }
 0x136   : > { %2414 = vmatmul.mubr.msk.bf16.gmra.mrb[20].mxu0 %vm883_vm2, %v862_v55  ;;  %v651_v61 = vpop.f32.mrb[10].mxu0  ;;  %v706_v2 = vpop.f32.mrb[10].mxu1  ;;  %v2608_v62 = vld [vmem:[%s3448_s5 + $0x8] sm:$0xff]  }
 0x137   : > { %v851_v63 = vmax.f32 %v835_v57, 0.0  ;;  %v836_v1 = vadd.f32 %v3057_v19, %v651_v61  ;;  %v2386_v5 = vpop.f32.mrb[11].mxu0  ;;  %v853_v6 = vmax.f32 %v837_v60, 0.0  ;;  %v838_v9 = vadd.f32 %v3057_v19, %v706_v2  ;;  %v2392_v10 = vpop.f32.mrb[11].mxu1  ;;  %v2607_v61 = vld [vmem:[%s3448_s5] sm:$0xff]  }
 0x139   : > { %v852_v13 = vmax.f32 %v836_v1, 0.0  ;;  %v854_v14 = vmax.f32 %v838_v9, 0.0 }
 0x13b   : > { %v863_v17 = vpack.c.bf16 %v852_v13, %v851_v63  ;;  %v864_v18 = vpack.c.bf16 %v854_v14, %v853_v6  ;;  %v3132_v63 = vld [vmem:[%s3447_s4] ss:$0 sm:$0xff] }
 0x13c   : > { %v758_v20 = vpop.f32.mrb[12].mxu0  ;;  %v813_v23 = vpop.f32.mrb[12].mxu1 }
 0x13d   : > { %2417 = vmatprep.mubr.msk.bf16.mxu0 %vm883_vm2, %v863_v17  ;;  %v839_v21 = vadd.f32 %v3057_v19, %v758_v20  ;;  %v2397_v22 = vpop.f32.mrb[13].mxu0  ;;  %v841_v24 = vadd.f32 %v3057_v19, %v813_v23  ;;  %v2403_v26 = vpop.f32.mrb[13].mxu1 }
 0x13e   : > { %2418 = vmatmul.mubr.msk.bf16.gmra.mrb[24].mxu0 %vm883_vm2, %v864_v18  ;;  %v761_v25 = vpop.f32.mrb[14].mxu0  ;;  %v816_v29 = vpop.f32.mrb[14].mxu1 }
 0x13f   : > { %v855_v27 = vmax.f32 %v839_v21, 0.0  ;;  %v840_v28 = vadd.f32 %v3057_v19, %v761_v25  ;;  %v2398_v30 = vpop.f32.mrb[15].mxu0  ;;  %v857_v31 = vmax.f32 %v841_v24, 0.0  ;;  %v842_v32 = vadd.f32 %v3057_v19, %v816_v29  ;;  %v2404_v33 = vpop.f32.mrb[15].mxu1 }
 0x141   : > { %v856_v34 = vmax.f32 %v840_v28, 0.0  ;;  %v858_v35 = vmax.f32 %v842_v32, 0.0 }
 0x143   : > { %v865_v36 = vpack.c.bf16 %v856_v34, %v855_v27  ;;  %v866_v37 = vpack.c.bf16 %v858_v35, %v857_v31 }
 0x145   : > { %2421 = vmatprep.mubr.msk.bf16.mxu0 %vm883_vm2, %v865_v36 }
 0x146   : > { %2422 = vmatmul.mubr.msk.bf16.gmra.mrb[28].mxu0 %vm883_vm2, %v866_v37 }
 0x147   : > { %2451 = vmatprep.mubr.msk.bf16.mxu0 %vm2778_vm0, %v2777_v0 }
 0x201   : > { %v2411_v38 = vpop.f32.mrb[16].mxu0 }
 0x202   : > { %v942_v39 = vpop.f32.mrb[17].mxu0 }
 0x203   : > { %v2412_v40 = vpop.f32.mrb[18].mxu0 }
 0x204   : > { %v1006_v41 = vpack.c.bf16 %v2412_v40, %v2411_v38  ;;  %v945_v42 = vpop.f32.mrb[19].mxu0 }
 0x205   : > { %v1005_v43 = vpack.c.bf16 %v945_v42, %v942_v39 }
 0x207   : > { %2426 = vmatpush3.bf16.msra.mxu1 %v1005_v43 }
 0x208   : > { %2431 = vmatprep.subr.bf16.mxu1 %v2777_v0 }
 0x209   : > { %v2415_v19 = vpop.f32.mrb[20].mxu0 }
 0x20a   : > { %2428 = vmatmul.mubr.msk.bf16.vlgmr.msra.gmra.mrb[16].mxu1 %vm390_vm1, %v2981_v3  ;;  %v958_v44 = vpop.f32.mrb[21].mxu0 }
 0x20b   : > { %2432 = vmatpush3.bf16.msra.mxu1 %v1006_v41  ;;  %v2416_v45 = vpop.f32.mrb[22].mxu0  ;;  %2433 = vmatprep.mubr.msk.bf16.mxu1 %vm2778_vm0, %v2777_v0 }
 0x20c   : > { %v1008_v46 = vpack.c.bf16 %v2416_v45, %v2415_v19  ;;  %v961_v47 = vpop.f32.mrb[23].mxu0  ;;  %2437 = vmatprep.subr.bf16.mxu1 %v2777_v0 }
 0x20d   : > { %v1007_v48 = vpack.c.bf16 %v961_v47, %v958_v44 }
 0x211   : > { %v2419_v49 = vpop.f32.mrb[24].mxu0 }
 0x212   : > { %2434 = vmatmul.mubr.msk.bf16.vlgmr.msra.gmra.mrb[20].mxu1 %vm390_vm1, %v2984_v4  ;;  %v974_v50 = vpop.f32.mrb[25].mxu0 }
 0x213   : > { %2438 = vmatpush3.bf16.msra.mxu1 %v1007_v48  ;;  %2439 = vmatprep.mubr.msk.bf16.mxu1 %vm2778_vm0, %v2777_v0  ;;  %v2420_v51 = vpop.f32.mrb[26].mxu0 }
 0x214   : > { %2443 = vmatprep.subr.bf16.mxu1 %v2777_v0  ;;  %v1010_v52 = vpack.c.bf16 %v2420_v51, %v2419_v49  ;;  %v977_v53 = vpop.f32.mrb[27].mxu0 }
 0x215   : > { %v1009_v54 = vpack.c.bf16 %v977_v53, %v974_v50 }
 0x217   : > { %2450 = vmatpush3.bf16.msra.mxu0 %v1009_v54 }
 0x218   : > { %2461 = vmatprep.subr.bf16.mxu0 %v2777_v0 }
 0x219   : > { %v2423_v55 = vpop.f32.mrb[28].mxu0 }
 0x21a   : > { %2440 = vmatmul.mubr.msk.bf16.vlgmr.msra.gmra.mrb[24].mxu1 %vm390_vm1, %v2997_v7  ;;  %2452 = vmatmul.mubr.msk.bf16.vlgmr.msra.gmra.mrb[32].mxu0 %vm390_vm1, %v3015_v11  ;;  %v990_v56 = vpop.f32.mrb[29].mxu0 }
 0x21b   : > { %2444 = vmatpush3.bf16.msra.mxu1 %v1008_v46  ;;  %2445 = vmatprep.mubr.msk.bf16.mxu1 %vm2778_vm0, %v2777_v0  ;;  %v2424_v57 = vpop.f32.mrb[30].mxu0 }
 0x21c   : > { %2455 = vmatprep.subr.bf16.mxu1 %v2777_v0  ;;  %v1012_v58 = vpack.c.bf16 %v2424_v57, %v2423_v55  ;;  %v993_v59 = vpop.f32.mrb[31].mxu0  ;;  %2463 = vmatprep.mubr.msk.bf16.mxu0 %vm2778_vm0, %v2777_v0 }
 0x21d   : > { %v1011_v60 = vpack.c.bf16 %v993_v59, %v990_v56 }
 0x21f   : > { %2462 = vmatpush3.bf16.msra.mxu0 %v1011_v60 }
 0x220   : > { %2473 = vmatprep.subr.bf16.mxu0 %v2607_v61 }
 0x222   : > { %2446 = vmatmul.mubr.msk.bf16.vlgmr.msra.gmra.mrb[28].mxu1 %vm390_vm1, %v3003_v8  ;;  %2464 = vmatmul.mubr.msk.bf16.vlgmr.msra.gmra.mrb[36].mxu0 %vm390_vm1, %v3036_v15 }
 0x223   : > { %2456 = vmatpush3.bf16.msra.mxu1 %v1010_v52  ;;  %2457 = vmatprep.mubr.msk.bf16.mxu1 %vm2778_vm0, %v2777_v0 }
 0x224   : > { %2467 = vmatprep.subr.bf16.mxu1 %v2777_v0  ;;  %2474 = vmatpush3.bf16.msra.mxu0 %v2607_v61 }
 0x225   : > { %2475 = vmatprep.subr.bf16.mxu0 %v2608_v62 }
 0x228   : > { %2476 = vmatpush3.bf16.msra.mxu0 %v2608_v62 }
 0x229   : > { %2517 = vmatprep.subr.bf16.mxu0 %v2777_v0 }
 0x22a   : > { %2458 = vmatmul.mubr.msk.bf16.vlgmr.msra.gmra.mrb[32].mxu1 %vm390_vm1, %v3020_v12 }
 0x22b   : > { %2468 = vmatpush3.bf16.msra.mxu1 %v1012_v58  ;;  %2469 = vmatprep.mubr.msk.bf16.mxu1 %vm2778_vm0, %v2777_v0 }
 0x22c   : > { %2493 = vmatprep.subr.bf16.mxu1 %v2777_v0 }
 0x232   : > { %2470 = vmatmul.mubr.msk.bf16.vlgmr.msra.gmra.mrb[36].mxu1 %vm390_vm1, %v3039_v16 }
 0x233   : > { %2495 = vmatprep.mubr.msk.bf16.mxu1 %vm2778_vm0, %v2777_v0 }
 0x2dd   : > { %v1047_v1 = vpop.f32.mrb[16].mxu1 }
 0x2de   : > { %v1348_v2 = vadd.f32 %v3132_v63, %v1047_v1  ;;  %v2429_v5 = vpop.f32.mrb[17].mxu1 }
 0x2df   : > { %v1050_v6 = vpop.f32.mrb[18].mxu1 }
 0x2e0   : > { %v1349_v9 = vadd.f32 %v3132_v63, %v1050_v6  ;;  %v2430_v10 = vpop.f32.mrb[19].mxu1  ;;  %v1364_v13 = vmax.f32 %v1348_v2, 0.0 }
 0x2e2   : > { %v1365_v14 = vmax.f32 %v1349_v9, 0.0 }
 0x2e4   : > { %v1380_v17 = vpack.c.bf16 %v1365_v14, %v1364_v13 }
 0x2e5   : > { %v1088_v18 = vpop.f32.mrb[20].mxu1 }
 0x2e6   : > { %v1350_v20 = vadd.f32 %v3132_v63, %v1088_v18  ;;  %v2435_v21 = vpop.f32.mrb[21].mxu1  ;;  %2477 = vmatprep.mubr.msk.bf16.mxu0 %vm883_vm2, %v1380_v17 }
 0x2e7   : > { %v1091_v22 = vpop.f32.mrb[22].mxu1 }
 0x2e8   : > { %v1351_v23 = vadd.f32 %v3132_v63, %v1091_v22  ;;  %v2436_v24 = vpop.f32.mrb[23].mxu1  ;;  %v1366_v25 = vmax.f32 %v1350_v20, 0.0 }
 0x2ea   : > { %v1367_v26 = vmax.f32 %v1351_v23, 0.0 }
 0x2ec   : > { %v1381_v27 = vpack.c.bf16 %v1367_v26, %v1366_v25 }
 0x2ed   : > { %v1129_v28 = vpop.f32.mrb[24].mxu1  ;;  %v1211_v29 = vpop.f32.mrb[32].mxu0 }
 0x2ee   : > { %v1352_v30 = vadd.f32 %v3132_v63, %v1129_v28  ;;  %v2441_v31 = vpop.f32.mrb[25].mxu1  ;;  %2478 = vmatmul.mubr.msk.bf16.vlgmr.msra.gmra.mrb[40].mxu0 %vm883_vm2, %v1381_v27  ;;  %v1356_v32 = vadd.f32 %v3132_v63, %v1211_v29  ;;  %v2453_v33 = vpop.f32.mrb[33].mxu0 }
 0x2ef   : > { %v1132_v34 = vpop.f32.mrb[26].mxu1  ;;  %v1214_v35 = vpop.f32.mrb[34].mxu0 }
 0x2f0   : > { %v1353_v36 = vadd.f32 %v3132_v63, %v1132_v34  ;;  %v2442_v37 = vpop.f32.mrb[27].mxu1  ;;  %v1372_v38 = vmax.f32 %v1356_v32, 0.0  ;;  %v1357_v39 = vadd.f32 %v3132_v63, %v1214_v35  ;;  %v2454_v40 = vpop.f32.mrb[35].mxu0  ;;  %v1368_v41 = vmax.f32 %v1352_v30, 0.0 }
 0x2f2   : > { %v1369_v42 = vmax.f32 %v1353_v36, 0.0  ;;  %v1373_v43 = vmax.f32 %v1357_v39, 0.0 }
 0x2f4   : > { %v1382_v19 = vpack.c.bf16 %v1369_v42, %v1368_v41  ;;  %v1384_v44 = vpack.c.bf16 %v1373_v43, %v1372_v38 }
 0x2f5   : > { %v1170_v45 = vpop.f32.mrb[28].mxu1  ;;  %v1293_v46 = vpop.f32.mrb[36].mxu0 }
 0x2f6   : > { %v1354_v47 = vadd.f32 %v3132_v63, %v1170_v45  ;;  %v2447_v48 = vpop.f32.mrb[29].mxu1  ;;  %2481 = vmatprep.mubr.msk.bf16.mxu0 %vm883_vm2, %v1382_v19  ;;  %v1360_v49 = vadd.f32 %v3132_v63, %v1293_v46  ;;  %v2465_v50 = vpop.f32.mrb[37].mxu0 }
 0x2f7   : > { %v1173_v51 = vpop.f32.mrb[30].mxu1  ;;  %v1296_v52 = vpop.f32.mrb[38].mxu0 }
 0x2f8   : > { %v1355_v53 = vadd.f32 %v3132_v63, %v1173_v51  ;;  %v2448_v54 = vpop.f32.mrb[31].mxu1  ;;  %v1376_v55 = vmax.f32 %v1360_v49, 0.0  ;;  %v1361_v56 = vadd.f32 %v3132_v63, %v1296_v52  ;;  %v2466_v57 = vpop.f32.mrb[39].mxu0  ;;  %v1370_v58 = vmax.f32 %v1354_v47, 0.0 }
 0x2fa   : > { %v1371_v59 = vmax.f32 %v1355_v53, 0.0  ;;  %v1377_v60 = vmax.f32 %v1361_v56, 0.0 }
 0x2fc   : > { %v1383_v61 = vpack.c.bf16 %v1371_v59, %v1370_v58  ;;  %v1386_v62 = vpack.c.bf16 %v1377_v60, %v1376_v55 }
 0x2fd   : > { %v1252_v1 = vpop.f32.mrb[32].mxu1 }
 0x2fe   : > { %v1358_v2 = vadd.f32 %v3132_v63, %v1252_v1  ;;  %v2459_v5 = vpop.f32.mrb[33].mxu1  ;;  %2482 = vmatmul.mubr.msk.bf16.gmra.mrb[44].mxu0 %vm883_vm2, %v1383_v61 }
 0x2ff   : > { %v1255_v6 = vpop.f32.mrb[34].mxu1  ;;  %2485 = vmatprep.mubr.msk.bf16.mxu0 %vm883_vm2, %v1384_v44 }
 0x300   : > { %v1374_v9 = vmax.f32 %v1358_v2, 0.0  ;;  %v1359_v10 = vadd.f32 %v3132_v63, %v1255_v6  ;;  %v2460_v13 = vpop.f32.mrb[35].mxu1 }
 0x302   : > { %v1375_v14 = vmax.f32 %v1359_v10, 0.0 }
 0x304   : > { %v1385_v17 = vpack.c.bf16 %v1375_v14, %v1374_v9 }
 0x305   : > { %v1334_v18 = vpop.f32.mrb[36].mxu1 }
 0x306   : > { %2486 = vmatmul.mubr.msk.bf16.gmra.mrb[48].mxu0 %vm883_vm2, %v1385_v17  ;;  %v1362_v20 = vadd.f32 %v3132_v63, %v1334_v18  ;;  %v2471_v21 = vpop.f32.mrb[37].mxu1 }
 0x307   : > { %v1337_v22 = vpop.f32.mrb[38].mxu1  ;;  %2489 = vmatprep.mubr.msk.bf16.mxu0 %vm883_vm2, %v1386_v62 }
 0x308   : > { %v1378_v23 = vmax.f32 %v1362_v20, 0.0  ;;  %v1363_v24 = vadd.f32 %v3132_v63, %v1337_v22  ;;  %v2472_v25 = vpop.f32.mrb[39].mxu1 }
 0x30a   : > { %v1379_v26 = vmax.f32 %v1363_v24, 0.0 }
 0x30c   : > { %v1387_v27 = vpack.c.bf16 %v1379_v26, %v1378_v23 }
 0x30e   : > { %2490 = vmatmul.mubr.msk.bf16.gmra.mrb[52].mxu0 %vm883_vm2, %v1387_v27 }
 0x30f   : > { %2519 = vmatprep.mubr.msk.bf16.mxu0 %vm2778_vm0, %v2777_v0 }
 0x3c1   : > { %v2479_v28 = vpop.f32.mrb[40].mxu0 }
 0x3c2   : > { %v1462_v29 = vpop.f32.mrb[41].mxu0 }
 0x3c3   : > { %v2480_v30 = vpop.f32.mrb[42].mxu0 }
 0x3c4   : > { %v1526_v31 = vpack.c.bf16 %v2480_v30, %v2479_v28  ;;  %v1465_v32 = vpop.f32.mrb[43].mxu0 }
 0x3c5   : > { %v1525_v33 = vpack.c.bf16 %v1465_v32, %v1462_v29 }
 0x3c7   : > { %2494 = vmatpush3.bf16.msra.mxu1 %v1525_v33 }
 0x3c8   : > { %2499 = vmatprep.subr.bf16.mxu1 %v2777_v0 }
 0x3ca   : > { %2496 = vmatmul.mubr.msk.bf16.vlgmr.msra.gmra.mrb[40].mxu1 %vm390_vm1, %v2981_v3 }
 0x3cb   : > { %2500 = vmatpush3.bf16.msra.mxu1 %v1526_v31  ;;  %2501 = vmatprep.mubr.msk.bf16.mxu1 %vm2778_vm0, %v2777_v0 }
 0x3cc   : > { %2505 = vmatprep.subr.bf16.mxu1 %v2777_v0 }
 0x3d1   : > { %v2483_v63 = vpop.f32.mrb[44].mxu0 }
 0x3d2   : > { %v1478_v34 = vpop.f32.mrb[45].mxu0  ;;  %2502 = vmatmul.mubr.msk.bf16.vlgmr.msra.gmra.mrb[44].mxu1 %vm390_vm1, %v2984_v4 }
 0x3d3   : > { %v2484_v35 = vpop.f32.mrb[46].mxu0  ;;  %2507 = vmatprep.mubr.msk.bf16.mxu1 %vm2778_vm0, %v2777_v0 }
 0x3d4   : > { %v1528_v36 = vpack.c.bf16 %v2484_v35, %v2483_v63  ;;  %v1481_v37 = vpop.f32.mrb[47].mxu0 }
 0x3d5   : > { %v1527_v38 = vpack.c.bf16 %v1481_v37, %v1478_v34 }
 0x3d7   : > { %2506 = vmatpush3.bf16.msra.mxu1 %v1527_v38 }
 0x3d8   : > { %2511 = vmatprep.subr.bf16.mxu1 %v2777_v0 }
 0x3d9   : > { %v2487_v3 = vpop.f32.mrb[48].mxu0 }
 0x3da   : > { %v1494_v39 = vpop.f32.mrb[49].mxu0  ;;  %2508 = vmatmul.mubr.msk.bf16.vlgmr.msra.gmra.mrb[48].mxu1 %vm390_vm1, %v2997_v7 }
 0x3db   : > { %v2488_v40 = vpop.f32.mrb[50].mxu0  ;;  %2512 = vmatpush3.bf16.msra.mxu1 %v1528_v36  ;;  %2513 = vmatprep.mubr.msk.bf16.mxu1 %vm2778_vm0, %v2777_v0 }
 0x3dc   : > { %v1530_v4 = vpack.c.bf16 %v2488_v40, %v2487_v3  ;;  %v1497_v41 = vpop.f32.mrb[51].mxu0  ;;  %2523 = vmatprep.subr.bf16.mxu1 %v2777_v0 }
 0x3dd   : > { %v1529_v42 = vpack.c.bf16 %v1497_v41, %v1494_v39 }
 0x3df   : > { %2518 = vmatpush3.bf16.msra.mxu0 %v1529_v42 }
 0x3e0   : > { %2529 = vmatprep.subr.bf16.mxu0 %v2777_v0 }
 0x3e1   : > { %v2491_v43 = vpop.f32.mrb[52].mxu0 }
 0x3e2   : > { %2514 = vmatmul.mubr.msk.bf16.vlgmr.msra.gmra.mrb[52].mxu1 %vm390_vm1, %v3003_v8  ;;  %v1510_v19 = vpop.f32.mrb[53].mxu0  ;;  %2520 = vmatmul.mubr.msk.bf16.vlgmr.msra.gmra.mrb[56].mxu0 %vm390_vm1, %v3015_v11  ;;  %v3197_v8 = vld [vmem:[%s3449_s6] ss:$0 sm:$0xff] }
 0x3e3   : > { %2524 = vmatpush3.bf16.msra.mxu1 %v1530_v4  ;;  %v2492_v7 = vpop.f32.mrb[54].mxu0  ;;  %2525 = vmatprep.mubr.msk.bf16.mxu1 %vm2778_vm0, %v2777_v0 }
 0x3e4   : > { %v1532_v44 = vpack.c.bf16 %v2492_v7, %v2491_v43  ;;  %v1513_v45 = vpop.f32.mrb[55].mxu0  ;;  %2531 = vmatprep.mubr.msk.bf16.mxu0 %vm2778_vm0, %v2777_v0  ;;  %2535 = vmatprep.subr.bf16.mxu1 %v2777_v0 }
 0x3e5   : > { %v1531_v46 = vpack.c.bf16 %v1513_v45, %v1510_v19 }
 0x3e7   : > { %2530 = vmatpush3.bf16.msra.mxu0 %v1531_v46 }
 0x3ea   : > { %2526 = vmatmul.mubr.msk.bf16.vlgmr.msra.gmra.mrb[56].mxu1 %vm390_vm1, %v3020_v12  ;;  %2532 = vmatmul.mubr.msk.bf16.vlgmr.msra.gmra.mrb[60].mxu0 %vm390_vm1, %v3036_v15 }
 0x3eb   : > { %2536 = vmatpush3.bf16.msra.mxu1 %v1532_v44  ;;  %2537 = vmatprep.mubr.msk.bf16.mxu1 %vm2778_vm0, %v2777_v0 }
 0x3f2   : > { %2538 = vmatmul.mubr.msk.bf16.vlgmr.msra.gmra.mrb[60].mxu1 %vm390_vm1, %v3039_v16 }
 0x49d   : > { %v1567_v11 = vpop.f32.mrb[40].mxu1 }
 0x49e   : > { %v3200_v47 = vadd.f32 %v3197_v8, %v1567_v11  ;;  %v2497_v12 = vpop.f32.mrb[41].mxu1 }
 0x49f   : > { %v1570_v48 = vpop.f32.mrb[42].mxu1 }
 0x4a0   : > { %v1885_v15 = vsel %vm1884_vm3, %v3200_v47, -inf  ;;  %v3205_v0 = vadd.f32 %v3197_v8, %v1570_v48  ;;  %v2498_v49 = vpop.f32.mrb[43].mxu1 }
 0x4a1   : > { %1886 = vmax.xlane.f32.xlu0 %v1885_v15 }
 0x4a2   : > { %v1888_v16 = vsel %vm1884_vm3, %v3205_v0, -inf }
 0x4a5   : > { %1889 = vmax.xlane.f32.xlu0 %v1888_v16  ;;  %v1608_v50 = vpop.f32.mrb[44].mxu1 }
 0x4a6   : > { %v3210_v51 = vadd.f32 %v3197_v8, %v1608_v50  ;;  %v2503_v52 = vpop.f32.mrb[45].mxu1 }
 0x4a7   : > { %v1611_v53 = vpop.f32.mrb[46].mxu1 }
 0x4a8   : > { %v1891_v54 = vsel %vm1884_vm3, %v3210_v51, -inf  ;;  %v3215_v55 = vadd.f32 %v3197_v8, %v1611_v53  ;;  %v2504_v56 = vpop.f32.mrb[47].mxu1 }
 0x4a9   : > { %1892 = vmax.xlane.f32.xlu1 %v1891_v54 }
 0x4aa   : > { %v1894_v57 = vsel %vm1884_vm3, %v3215_v55, -inf }
 0x4ad   : > { %1895 = vmax.xlane.f32.xlu1 %v1894_v57  ;;  %v1649_v58 = vpop.f32.mrb[48].mxu1 }
 0x4ae   : > { %v3220_v59 = vadd.f32 %v3197_v8, %v1649_v58  ;;  %v2509_v60 = vpop.f32.mrb[49].mxu1 }
 0x4af   : > { %v1652_v61 = vpop.f32.mrb[50].mxu1 }
 0x4b0   : > { %v3223_v62 = vadd.f32 %v3197_v8, %v1652_v61  ;;  %v1897_v1 = vsel %vm1884_vm3, %v3220_v59, -inf  ;;  %v2510_v2 = vpop.f32.mrb[51].mxu1 }
 0x4b1   : > { %1898 = vmax.xlane.f32.xlu0 %v1897_v1 }
 0x4b2   : > { %v1900_v5 = vsel %vm1884_vm3, %v3223_v62, -inf }
 0x4b3   : > { %1901 = vmax.xlane.f32.xlu1 %v1900_v5 }
 0x4b5   : > { %v1690_v6 = vpop.f32.mrb[52].mxu1  ;;  %v1731_v9 = vpop.f32.mrb[56].mxu0 }
 0x4b6   : > { %v3230_v10 = vadd.f32 %v3197_v8, %v1690_v6  ;;  %v2515_v13 = vpop.f32.mrb[53].mxu1  ;;  %v3233_v14 = vadd.f32 %v3197_v8, %v1731_v9  ;;  %v2521_v17 = vpop.f32.mrb[57].mxu0 }
 0x4b7   : > { %v1693_v18 = vpop.f32.mrb[54].mxu1  ;;  %v1734_v20 = vpop.f32.mrb[58].mxu0 }
 0x4b8   : > { %v3236_v21 = vadd.f32 %v3197_v8, %v1693_v18  ;;  %v1903_v22 = vsel %vm1884_vm3, %v3230_v10, -inf  ;;  %v2516_v23 = vpop.f32.mrb[55].mxu1  ;;  %v2522_v24 = vpop.f32.mrb[59].mxu0  ;;  %v3243_v26 = vadd.f32 %v3197_v8, %v1734_v20  ;;  %v1909_v27 = vsel %vm1884_vm3, %v3233_v14, -inf }
 0x4b9   : > { %1904 = vmax.xlane.f32.xlu0 %v1903_v22 }
 0x4ba   : > { %v1906_v25 = vsel %vm1884_vm3, %v3236_v21, -inf  ;;  %v1912_v32 = vsel %vm1884_vm3, %v3243_v26, -inf }
 0x4bb   : > { %1907 = vmax.xlane.f32.xlu1 %v1906_v25 }
 0x4bd   : > { %v1772_v28 = vpop.f32.mrb[56].mxu1  ;;  %1910 = vmax.xlane.f32.xlu0 %v1909_v27  ;;  %v1813_v29 = vpop.f32.mrb[60].mxu0 }
 0x4be   : > { %v3248_v30 = vadd.f32 %v3197_v8, %v1772_v28  ;;  %v2527_v31 = vpop.f32.mrb[57].mxu1  ;;  %v3253_v33 = vadd.f32 %v3197_v8, %v1813_v29  ;;  %v2533_v63 = vpop.f32.mrb[61].mxu0 }
 0x4bf   : > { %v1775_v34 = vpop.f32.mrb[58].mxu1  ;;  %1913 = vmax.xlane.f32.xlu1 %v1912_v32  ;;  %v1816_v35 = vpop.f32.mrb[62].mxu0 }
 0x4c0   : > { %v3256_v36 = vadd.f32 %v3197_v8, %v1775_v34  ;;  %v1915_v37 = vsel %vm1884_vm3, %v3248_v30, -inf  ;;  %v2528_v38 = vpop.f32.mrb[59].mxu1  ;;  %v2534_v3 = vpop.f32.mrb[63].mxu0  ;;  %v3263_v40 = vadd.f32 %v3197_v8, %v1816_v35  ;;  %v1921_v4 = vsel %vm1884_vm3, %v3253_v33, -inf }
 0x4c1   : > { %1916 = vmax.xlane.f32.xlu0 %v1915_v37 }
 0x4c2   : > { %v1918_v39 = vsel %vm1884_vm3, %v3256_v36, -inf  ;;  %v1924_v19 = vsel %vm1884_vm3, %v3263_v40, -inf }
 0x4c3   : > { %1919 = vmax.xlane.f32.xlu1 %v1918_v39 }
 0x4c5   : > { %v1854_v41 = vpop.f32.mrb[60].mxu1  ;;  %1922 = vmax.xlane.f32.xlu0 %v1921_v4 }
 0x4c6   : > { %v3268_v42 = vadd.f32 %v3197_v8, %v1854_v41  ;;  %v2539_v43 = vpop.f32.mrb[61].mxu1 }
 0x4c7   : > { %v1857_v7 = vpop.f32.mrb[62].mxu1  ;;  %1925 = vmax.xlane.f32.xlu1 %v1924_v19 }
 0x4c8   : > { %v3273_v44 = vadd.f32 %v3197_v8, %v1857_v7  ;;  %v1927_v45 = vsel %vm1884_vm3, %v3268_v42, -inf  ;;  %v2540_v46 = vpop.f32.mrb[63].mxu1 }
 0x4c9   : > { %1928 = vmax.xlane.f32.xlu0 %v1927_v45 }
 0x4ca   : > { %v1930_v11 = vsel %vm1884_vm3, %v3273_v44, -inf }
 0x4cb   : > { %1931 = vmax.xlane.f32.xlu1 %v1930_v11 }
 0x52e   : > { %v3279_v12 = vpop.xlane.xlu0 %1886 }
 0x52f   : > { %v1933_v48 = vsub.f32 %v3200_v47, %v3279_v12 }
 0x531   : > { %v1949_v15 = vmul.f32 1.442695, %v1933_v48 }
 0x532   : > { %v3283_v49 = vpop.xlane.xlu0 %1889 }
 0x533   : > { %2609 = vpow2.f32 %v1949_v15  ;;  %v1934_v8 = vsub.f32 %v3205_v0, %v3283_v49 }
 0x535   : > { %v1951_v16 = vmul.f32 1.442695, %v1934_v8 }
 0x536   : > { %v3287_v50 = vpop.xlane.xlu1 %1892 }
 0x537   : > { %2611 = vpow2.f32 %v1951_v16  ;;  %v1935_v52 = vsub.f32 %v3210_v51, %v3287_v50 }
 0x539   : > { %v1953_v53 = vmul.f32 1.442695, %v1935_v52 }
 0x53a   : > { %v3291_v54 = vpop.xlane.xlu1 %1895 }
 0x53b   : > { %2613 = vpow2.f32 %v1953_v53  ;;  %v1936_v56 = vsub.f32 %v3215_v55, %v3291_v54 }
 0x53d   : > { %v2610_v57 = vpop.eup %2609  ;;  %v1955_v58 = vmul.f32 1.442695, %v1936_v56 }
 0x53e   : > { %v3295_v60 = vpop.xlane.xlu0 %1898  ;;  %v1981_v61 = vsel %vm1884_vm3, %v2610_v57, 0.0 }
 0x53f   : > { %2615 = vpow2.f32 %v1955_v58  ;;  %v1937_v1 = vsub.f32 %v3220_v59, %v3295_v60  ;;  %1982 = vadd.xlane.f32.xlu0 %v1981_v61 }
 0x540   : > { %v3300_v2 = vpop.xlane.xlu1 %1901 }
 0x541   : > { %v2612_v5 = vpop.eup %2611  ;;  %v1957_v6 = vmul.f32 1.442695, %v1937_v1  ;;  %v1938_v9 = vsub.f32 %v3223_v62, %v3300_v2 }
 0x542   : > { %v1984_v13 = vsel %vm1884_vm3, %v2612_v5, 0.0 }
 0x543   : > { %2617 = vpow2.f32 %v1957_v6  ;;  %v1959_v17 = vmul.f32 1.442695, %v1938_v9  ;;  %1985 = vadd.xlane.f32.xlu1 %v1984_v13 }
 0x545   : > { %v2614_v18 = vpop.eup %2613  ;;  %2619 = vpow2.f32 %v1959_v17 }
 0x546   : > { %v3305_v20 = vpop.xlane.xlu0 %1904  ;;  %v1987_v22 = vsel %vm1884_vm3, %v2614_v18, 0.0 }
 0x547   : > { %v1939_v23 = vsub.f32 %v3230_v10, %v3305_v20  ;;  %1988 = vadd.xlane.f32.xlu0 %v1987_v22 }
 0x548   : > { %v3310_v24 = vpop.xlane.xlu1 %1907 }
 0x549   : > { %v2616_v25 = vpop.eup %2615  ;;  %v1961_v27 = vmul.f32 1.442695, %v1939_v23  ;;  %v1940_v28 = vsub.f32 %v3236_v21, %v3310_v24 }
 0x54a   : > { %v3314_v29 = vpop.xlane.xlu0 %1910  ;;  %v1990_v31 = vsel %vm1884_vm3, %v2616_v25, 0.0 }
 0x54b   : > { %2621 = vpow2.f32 %v1961_v27  ;;  %v1963_v32 = vmul.f32 1.442695, %v1940_v28  ;;  %v1941_v63 = vsub.f32 %v3233_v14, %v3314_v29  ;;  %1991 = vadd.xlane.f32.xlu1 %v1990_v31 }
 0x54c   : > { %v3319_v34 = vpop.xlane.xlu1 %1913 }
 0x54d   : > { %v2618_v35 = vpop.eup %2617  ;;  %2623 = vpow2.f32 %v1963_v32  ;;  %v1965_v37 = vmul.f32 1.442695, %v1941_v63  ;;  %v1942_v38 = vsub.f32 %v3243_v26, %v3319_v34 }
 0x54e   : > { %v3323_v3 = vpop.xlane.xlu0 %1916  ;;  %v1993_v39 = vsel %vm1884_vm3, %v2618_v35, 0.0 }
 0x54f   : > { %v2620_v4 = vpop.eup %2619  ;;  %2625 = vpow2.f32 %v1965_v37  ;;  %v1967_v41 = vmul.f32 1.442695, %v1942_v38  ;;  %v1943_v43 = vsub.f32 %v3248_v30, %v3323_v3  ;;  %1994 = vadd.xlane.f32.xlu0 %v1993_v39 }
 0x550   : > { %v3328_v19 = vpop.xlane.xlu1 %1919  ;;  %v1996_v7 = vsel %vm1884_vm3, %v2620_v4, 0.0 }
 0x551   : > { %2627 = vpow2.f32 %v1967_v41  ;;  %v1969_v45 = vmul.f32 1.442695, %v1943_v43  ;;  %v1944_v46 = vsub.f32 %v3256_v36, %v3328_v19  ;;  %1997 = vadd.xlane.f32.xlu1 %v1996_v7 }
 0x552   : > { %v3333_v11 = vpop.xlane.xlu0 %1922 }
 0x553   : > { %2629 = vpow2.f32 %v1969_v45  ;;  %v1971_v48 = vmul.f32 1.442695, %v1944_v46  ;;  %v1945_v15 = vsub.f32 %v3253_v33, %v3333_v11 }
 0x554   : > { %v3337_v8 = vpop.xlane.xlu1 %1925 }
 0x555   : > { %v2622_v16 = vpop.eup %2621  ;;  %2631 = vpow2.f32 %v1971_v48  ;;  %v1973_v52 = vmul.f32 1.442695, %v1945_v15  ;;  %v1946_v53 = vsub.f32 %v3263_v40, %v3337_v8 }
 0x556   : > { %v3341_v56 = vpop.xlane.xlu0 %1928  ;;  %v1999_v57 = vsel %vm1884_vm3, %v2622_v16, 0.0 }
 0x557   : > { %v2624_v58 = vpop.eup %2623  ;;  %2633 = vpow2.f32 %v1973_v52  ;;  %v1975_v61 = vmul.f32 1.442695, %v1946_v53  ;;  %v1947_v1 = vsub.f32 %v3268_v42, %v3341_v56  ;;  %2000 = vadd.xlane.f32.xlu0 %v1999_v57 }
 0x558   : > { %v3346_v5 = vpop.xlane.xlu1 %1931  ;;  %v2002_v6 = vsel %vm1884_vm3, %v2624_v58, 0.0 }
 0x559   : > { %v2626_v9 = vpop.eup %2625  ;;  %2635 = vpow2.f32 %v1975_v61  ;;  %v1977_v13 = vmul.f32 1.442695, %v1947_v1  ;;  %v1948_v17 = vsub.f32 %v3273_v44, %v3346_v5  ;;  %2003 = vadd.xlane.f32.xlu1 %v2002_v6 }
 0x55a   : > { %v2005_v18 = vsel %vm1884_vm3, %v2626_v9, 0.0 }
 0x55b   : > { %v2628_v22 = vpop.eup %2627  ;;  %2637 = vpow2.f32 %v1977_v13  ;;  %v1979_v23 = vmul.f32 1.442695, %v1948_v17  ;;  %2006 = vadd.xlane.f32.xlu0 %v2005_v18 }
 0x55c   : > { %v2008_v25 = vsel %vm1884_vm3, %v2628_v22, 0.0 }
 0x55d   : > { %v2630_v27 = vpop.eup %2629  ;;  %2639 = vpow2.f32 %v1979_v23  ;;  %2009 = vadd.xlane.f32.xlu1 %v2008_v25 }
 0x55e   : > { %v2011_v28 = vsel %vm1884_vm3, %v2630_v27, 0.0 }
 0x55f   : > { %v2632_v31 = vpop.eup %2631  ;;  %2012 = vadd.xlane.f32.xlu0 %v2011_v28 }
 0x560   : > { %v2014_v32 = vsel %vm1884_vm3, %v2632_v31, 0.0 }
 0x561   : > { %v2634_v63 = vpop.eup %2633  ;;  %2015 = vadd.xlane.f32.xlu1 %v2014_v32 }
 0x562   : > { %v2017_v35 = vsel %vm1884_vm3, %v2634_v63, 0.0 }
 0x563   : > { %v2636_v37 = vpop.eup %2635  ;;  %2018 = vadd.xlane.f32.xlu0 %v2017_v35 }
 0x564   : > { %v2020_v38 = vsel %vm1884_vm3, %v2636_v37, 0.0 }
 0x565   : > { %v2638_v39 = vpop.eup %2637  ;;  %2021 = vadd.xlane.f32.xlu1 %v2020_v38 }
 0x566   : > { %v2023_v4 = vsel %vm1884_vm3, %v2638_v39, 0.0 }
 0x567   : > { %v2640_v41 = vpop.eup %2639  ;;  %2024 = vadd.xlane.f32.xlu0 %v2023_v4 }
 0x568   : > { %v2026_v43 = vsel %vm1884_vm3, %v2640_v41, 0.0 }
 0x569   : > { %2027 = vadd.xlane.f32.xlu1 %v2026_v43 }
 0x5cc   : > { %v1983_v7 = vpop.xlane.xlu0 %1982 }
 0x5cd   : > { %2641 = vlog2.f32 %v1983_v7 }
 0x5d0   : > { %v1986_v45 = vpop.xlane.xlu1 %1985 }
 0x5d1   : > { %2643 = vlog2.f32 %v1986_v45 }
 0x5d4   : > { %v1989_v46 = vpop.xlane.xlu0 %1988 }
 0x5d5   : > { %2645 = vlog2.f32 %v1989_v46 }
 0x5d7   : > { %v2642_v48 = vpop.eup %2641 }
 0x5d8   : > { %v2030_v15 = vmul.f32 0.6931472, %v2642_v48  ;;  %v1992_v16 = vpop.xlane.xlu1 %1991 }
 0x5d9   : > { %2647 = vlog2.f32 %v1992_v16 }
 0x5da   : > { %v2061_v52 = vadd.f32 %v2030_v15, %v3279_v12 }
 0x5db   : > { %v2644_v53 = vpop.eup %2643 }
 0x5dc   : > { %v2077_v57 = vsub.f32 %v3200_v47, %v2061_v52  ;;  %v2032_v58 = vmul.f32 0.6931472, %v2644_v53  ;;  %v1995_v61 = vpop.xlane.xlu0 %1994 }
 0x5dd   : > { %2649 = vlog2.f32 %v1995_v61 }
 0x5de   : > { %2093 = vst.msk [vmem:[%s3365_s27] sm:$0xff] %vm1884_vm3, %v2077_v57  ;;  %v2062_v1 = vadd.f32 %v2032_v58, %v3283_v49  ;;  %v1998_v6 = vpop.xlane.xlu1 %1997 }
 0x5df   : > { %v2646_v12 = vpop.eup %2645  ;;  %2651 = vlog2.f32 %v1998_v6 }
 0x5e0   : > { %v2078_v9 = vsub.f32 %v3205_v0, %v2062_v1  ;;  %v2034_v13 = vmul.f32 0.6931472, %v2646_v12 }
 0x5e2   : > { %2094 = vst.msk [vmem:[%s3365_s27 + $0x8] sm:$0xff] %vm1884_vm3, %v2078_v9  ;;  %v2063_v17 = vadd.f32 %v2034_v13, %v3287_v50 }
 0x5e3   : > { %v2648_v47 = vpop.eup %2647 }
 0x5e4   : > { %v2079_v18 = vsub.f32 %v3210_v51, %v2063_v17  ;;  %v2036_v22 = vmul.f32 0.6931472, %v2648_v47  ;;  %v2001_v23 = vpop.xlane.xlu0 %2000 }
 0x5e5   : > { %2653 = vlog2.f32 %v2001_v23 }
 0x5e6   : > { %2095 = vst.msk [vmem:[%s3365_s27 + $0x10] sm:$0xff] %vm1884_vm3, %v2079_v18  ;;  %v2064_v49 = vadd.f32 %v2036_v22, %v3291_v54  ;;  %v2004_v25 = vpop.xlane.xlu1 %2003 }
 0x5e7   : > { %v2650_v27 = vpop.eup %2649  ;;  %2655 = vlog2.f32 %v2004_v25 }
 0x5e8   : > { %v2080_v0 = vsub.f32 %v3215_v55, %v2064_v49  ;;  %v2038_v28 = vmul.f32 0.6931472, %v2650_v27  ;;  %v2007_v31 = vpop.xlane.xlu0 %2006 }
 0x5e9   : > { %v2652_v50 = vpop.eup %2651  ;;  %2657 = vlog2.f32 %v2007_v31 }
 0x5ea   : > { %2096 = vst.msk [vmem:[%s3365_s27 + $0x18] sm:$0xff] %vm1884_vm3, %v2080_v0  ;;  %v2065_v51 = vadd.f32 %v2038_v28, %v3295_v60  ;;  %v2040_v32 = vmul.f32 0.6931472, %v2652_v50  ;;  %v2010_v63 = vpop.xlane.xlu1 %2009 }
 0x5eb   : > { %2659 = vlog2.f32 %v2010_v63 }
 0x5ec   : > { %v2081_v54 = vsub.f32 %v3220_v59, %v2065_v51  ;;  %v2066_v35 = vadd.f32 %v2040_v32, %v3300_v2  ;;  %v2013_v37 = vpop.xlane.xlu0 %2012 }
 0x5ed   : > { %2661 = vlog2.f32 %v2013_v37 }
 0x5ee   : > { %2097 = vst.msk [vmem:[%s3365_s27 + $0x20] sm:$0xff] %vm1884_vm3, %v2081_v54  ;;  %v2082_v55 = vsub.f32 %v3223_v62, %v2066_v35  ;;  %v2016_v38 = vpop.xlane.xlu1 %2015 }
 0x5ef   : > { %v2654_v39 = vpop.eup %2653  ;;  %2663 = vlog2.f32 %v2016_v38 }
 0x5f0   : > { %2098 = vst.msk [vmem:[%s3365_s27 + $0x28] sm:$0xff] %vm1884_vm3, %v2082_v55  ;;  %v2042_v60 = vmul.f32 0.6931472, %v2654_v39  ;;  %v2019_v4 = vpop.xlane.xlu0 %2018 }
 0x5f1   : > { %v2656_v41 = vpop.eup %2655  ;;  %2665 = vlog2.f32 %v2019_v4 }
 0x5f2   : > { %v2067_v59 = vadd.f32 %v2042_v60, %v3305_v20  ;;  %v2044_v43 = vmul.f32 0.6931472, %v2656_v41  ;;  %v2022_v2 = vpop.xlane.xlu1 %2021 }
 0x5f3   : > { %v2658_v7 = vpop.eup %2657  ;;  %2667 = vlog2.f32 %v2022_v2 }
 0x5f4   : > { %v2083_v45 = vsub.f32 %v3230_v10, %v2067_v59  ;;  %v2068_v62 = vadd.f32 %v2044_v43, %v3310_v24  ;;  %v2046_v46 = vmul.f32 0.6931472, %v2658_v7  ;;  %v2025_v48 = vpop.xlane.xlu0 %2024 }
 0x5f5   : > { %v2660_v15 = vpop.eup %2659  ;;  %2669 = vlog2.f32 %v2025_v48 }
 0x5f6   : > { %2099 = vst.msk [vmem:[%s3365_s27 + $0x30] sm:$0xff] %vm1884_vm3, %v2083_v45  ;;  %v2084_v16 = vsub.f32 %v3236_v21, %v2068_v62  ;;  %v2069_v20 = vadd.f32 %v2046_v46, %v3314_v29  ;;  %v2048_v52 = vmul.f32 0.6931472, %v2660_v15  ;;  %v2028_v53 = vpop.xlane.xlu1 %2027 }
 0x5f7   : > { %v2662_v57 = vpop.eup %2661  ;;  %2671 = vlog2.f32 %v2028_v53 }
 0x5f8   : > { %2100 = vst.msk [vmem:[%s3365_s27 + $0x38] sm:$0xff] %vm1884_vm3, %v2084_v16  ;;  %v2085_v10 = vsub.f32 %v3233_v14, %v2069_v20  ;;  %v2070_v24 = vadd.f32 %v2048_v52, %v3319_v34  ;;  %v2050_v58 = vmul.f32 0.6931472, %v2662_v57 }
 0x5f9   : > { %v2664_v61 = vpop.eup %2663 }
 0x5fa   : > { %2101 = vst.msk [vmem:[%s3365_s27 + $0x40] sm:$0xff] %vm1884_vm3, %v2085_v10  ;;  %v2086_v21 = vsub.f32 %v3243_v26, %v2070_v24  ;;  %v2071_v29 = vadd.f32 %v2050_v58, %v3323_v3  ;;  %v2052_v1 = vmul.f32 0.6931472, %v2664_v61 }
 0x5fb   : > { %v2666_v6 = vpop.eup %2665 }
 0x5fc   : > { %2102 = vst.msk [vmem:[%s3365_s27 + $0x48] sm:$0xff] %vm1884_vm3, %v2086_v21  ;;  %v2087_v12 = vsub.f32 %v3248_v30, %v2071_v29  ;;  %v2072_v14 = vadd.f32 %v2052_v1, %v3328_v19  ;;  %v2054_v9 = vmul.f32 0.6931472, %v2666_v6 }
 0x5fd   : > { %v2668_v34 = vpop.eup %2667 }
 0x5fe   : > { %2103 = vst.msk [vmem:[%s3365_s27 + $0x50] sm:$0xff] %vm1884_vm3, %v2087_v12  ;;  %v2088_v13 = vsub.f32 %v3256_v36, %v2072_v14  ;;  %v2073_v26 = vadd.f32 %v2054_v9, %v3333_v11  ;;  %v2056_v3 = vmul.f32 0.6931472, %v2668_v34 }
 0x5ff   : > { %v2670_v17 = vpop.eup %2669 }
 0x600   : > { %2104 = vst.msk [vmem:[%s3365_s27 + $0x58] sm:$0xff] %vm1884_vm3, %v2088_v13  ;;  %v2089_v47 = vsub.f32 %v3253_v33, %v2073_v26  ;;  %v2074_v30 = vadd.f32 %v2056_v3, %v3337_v8  ;;  %v2058_v19 = vmul.f32 0.6931472, %v2670_v17 }
 0x601   : > { %v2672_v18 = vpop.eup %2671 }
 0x602   : > { %2105 = vst.msk [vmem:[%s3365_s27 + $0x60] sm:$0xff] %vm1884_vm3, %v2089_v47  ;;  %v2090_v22 = vsub.f32 %v3263_v40, %v2074_v30  ;;  %v2075_v36 = vadd.f32 %v2058_v19, %v3341_v56  ;;  %v2060_v23 = vmul.f32 0.6931472, %v2672_v18 }
 0x604   : > { %2106 = vst.msk [vmem:[%s3365_s27 + $0x68] sm:$0xff] %vm1884_vm3, %v2090_v22  ;;  %v2091_v11 = vsub.f32 %v3268_v42, %v2075_v36  ;;  %v2076_v49 = vadd.f32 %v2060_v23, %v3346_v5 }
 0x606   : > { %2107 = vst.msk [vmem:[%s3365_s27 + $0x70] sm:$0xff] %vm1884_vm3, %v2091_v11  ;;  %v2092_v33 = vsub.f32 %v3273_v44, %v2076_v49 }
 0x608   : > { %2108 = vst.msk [vmem:[%s3365_s27 + $0x78] sm:$0xff] %vm1884_vm3, %v2092_v33 }
 0x609 PF: > { %p20_p11 = scmp.ge.s32.totalorder %s2839_s29, 4   ;;  %s3457_s24 = smov %s2763_s25 }
 0x60a   : > { %s3458_s25 = smov %s2767_s26  ;;  %s3459_s26 = smov %s2849_s9 }
 0x60b   : > { %s3460_s27 = smov %s2839_s29  ;;  %22 = sbr.rel (!%p20_p11) target bundleno = 5 (0x5), region = 101 }
 0x612   :  { %2133 = vsyncpa [#allocation3], 1 }
 0x613   :  { %2135 = vsyncpa [#allocation3 + $0x1], 1 }
 0x614   :  { %2136 = vsyncpa [#allocation5], 1 }
 0x615   :  { %2138 = vsyncpa [#allocation5 + $0x1], 1 }

</bundles_post_ra>
